<compile_context>
chip_gen: v6e
topology: v6e:2x2x1
jax: 0.10.0
libtpu: 0.0.40
codegen_flags: <defaults>
</compile_context>

<pallas_src>
import functools

import jax
import jax.numpy as jnp
from jax.experimental import pallas as pl
from jax.experimental.pallas import tpu as pltpu


def se_kernel(x_ref, w1_ref, shift_ref, w2_ref, o_ref, *, inv_hw):
    # x_ref block: (Nt, C, HW_pad), spatial (lane) axis last and lane-dense.
    # Feed the pool directly from the ref (f32 accumulation, no full-tile f32
    # copy) and do NOT keep the tile value live across the matmul section.
    pooled = jnp.sum(x_ref[...], axis=-1, dtype=jnp.float32) * inv_hw   # (Nt, C)

    # 1x1 conv #1 (BN scale pre-folded into the weight), +shift, ReLU.
    h = jnp.dot(pooled, w1_ref[...], preferred_element_type=jnp.float32)  # (Nt, E)
    h = jnp.maximum(h + shift_ref[...], 0.0)

    # 1x1 conv #2 (hardsigmoid's 1/6 pre-folded), +0.5, clip -> gate in [0,1].
    s = jnp.dot(h, w2_ref[...], preferred_element_type=jnp.float32)       # (Nt, C)
    s = jnp.clip(s + 0.5, 0.0, 1.0)

    # Gate the tile: re-read the ref (the scheduler streams the multiply) and
    # cast only the tiny (Nt, C, 1) scale.  For bf16 I/O this rounds the gate
    # to bf16 before the multiply — harmless for a [0,1] gate.
    o_ref[...] = x_ref[...] * s[:, :, None].astype(o_ref.dtype)


def _per_block_vmem_budget():
    """Generation-aware (per-block budget bytes, physical VMEM bytes).

    BlockSpec double-buffers the input and output blocks (4x block resident);
    folded weights and compiler scratch need headroom on top.
    """
    try:
        phys = int(pltpu.get_tpu_info().vmem_capacity_bytes)
    except Exception:
        phys = 64 << 20  # conservative fallback (v7x per-TensorCore size)
    kind = ""
    try:
        kind = jax.devices()[0].device_kind.lower()
    except Exception:
        pass
    if ("v5 lite" in kind) or ("v5e" in kind) or ("v5litepod" in kind):
        # v5e: keep 4 x block ~= 12 MiB, comfortably inside scoped VMEM.
        return 3 << 20, phys
    if phys <= (64 << 20):
        # v7x: 64 MiB per TensorCore -> 2x(in+out)+weights ~<= 26 MiB.
        return 6 << 20, phys
    # v6e / v5p: 128 MiB physical -> bigger blocks amortize per-step overhead.
    return 7 << 20, phys


def _choose_block_n(N, bytes_per_sample, block_budget):
    """Samples per grid step from the VMEM budget (grid may be ragged)."""
    bn = max(1, min(N, block_budget // max(bytes_per_sample, 1)))
    steps = -(-N // bn)
    if steps == 1 and N >= 2:
        # A single grid step idles one v7x TensorCore; split in two if each
        # half still amortizes the ~0.35 us per-step overhead.
        half = -(-N // 2)
        if half * bytes_per_sample >= (512 << 10):
            bn = half
    elif steps > 2 and steps % 2 == 1:
        # Prefer an even step count (balanced megacore work) if it doesn't
        # shrink blocks below half the budget.
        alt = -(-N // (steps + 1))
        if alt * bytes_per_sample >= block_budget // 2:
            bn = alt
    return bn


def se_module(x_nchw, w1, w2, bn_gamma, bn_beta, bn_mean, bn_var, eps=1e-5,
              block_n=None, alias_input=False):
    """SeModule forward.  x_nchw: (N, C, H, W);  w1: (E, C);  w2: (C, E)."""
    N, C, H, W = x_nchw.shape
    E = w1.shape[0]
    HW = H * W

    # NCHW -> (N, C, HW): pure reshape (no HBM transpose).  Zero-pad the
    # spatial axis to a multiple of 128 so loads/stores are lane-dense; the
    # pooling mean uses the true HW and the padded lanes stay zero.
    HW_pad = -(-HW // 128) * 128
    x = x_nchw.reshape(N, C, HW)
    if HW_pad != HW:
        x = jnp.pad(x, ((0, 0), (0, 0), (0, HW_pad - HW)))

    # Fold eval-mode BatchNorm into the first conv weight (+ shift) and the
    # hardsigmoid's 1/6 into the second conv weight.
    inv_std = 1.0 / jnp.sqrt(bn_var.astype(jnp.float32) + eps)
    scale = bn_gamma.astype(jnp.float32) * inv_std                          # (E,)
    shift = (bn_beta.astype(jnp.float32)
             - bn_mean.astype(jnp.float32) * scale).reshape(1, E)           # (1, E)
    # bf16 folded weights (f32 MXU accumulation) once they are big enough for
    # their VMEM residency to matter (real SE sizes, C up to 960 / E up to 240).
    w_dtype = jnp.bfloat16 if (C * E) >= (256 * 64) else jnp.float32
    w1s = (jnp.transpose(w1).astype(jnp.float32) * scale[None, :]).astype(w_dtype)   # (C, E)
    w2s = (jnp.transpose(w2).astype(jnp.float32) * (1.0 / 6.0)).astype(w_dtype)      # (E, C)

    block_budget, phys_vmem = _per_block_vmem_budget()
    bytes_per_sample = C * HW_pad * x.dtype.itemsize
    if block_n is None:
        block_n = _choose_block_n(N, bytes_per_sample, block_budget)
    block_n = max(1, min(block_n, N))
    grid = (pl.cdiv(N, block_n),)

    block_bytes = block_n * bytes_per_sample
    weight_bytes = ((w1s.size + w2s.size) * jnp.dtype(w_dtype).itemsize
                    + shift.size * 4)
    vmem_limit = int(min(phys_vmem,
                         max(32 << 20,
                             4 * block_bytes + 2 * weight_bytes + (8 << 20))))

    kernel = functools.partial(se_kernel, inv_hw=1.0 / HW)

    out = pl.pallas_call(
        kernel,
        out_shape=jax.ShapeDtypeStruct((N, C, HW_pad), x.dtype),
        grid_spec=pltpu.PrefetchScalarGridSpec(
            num_scalar_prefetch=0,
            grid=grid,
            in_specs=[
                pl.BlockSpec((block_n, C, HW_pad), lambda n: (n, 0, 0)),
                pl.BlockSpec((C, E), lambda n: (0, 0)),
                pl.BlockSpec((1, E), lambda n: (0, 0)),
                pl.BlockSpec((E, C), lambda n: (0, 0)),
            ],
            out_specs=pl.BlockSpec((block_n, C, HW_pad), lambda n: (n, 0, 0)),
        ),
        compiler_params=pltpu.CompilerParams(
            dimension_semantics=("parallel",),
            vmem_limit_bytes=vmem_limit,
        ),
        input_output_aliases=({0: 0} if alias_input else {}),
    )(x, w1s, shift, w2s)

    if HW_pad != HW:
        out = out[:, :, :HW]
    return out.reshape(N, C, H, W)


def se_module_ref(x, w1, w2, bn_gamma, bn_beta, bn_mean, bn_var, eps=1e-5):
    """Pure-JAX reference (NCHW), mirrors the PyTorch forward."""
    pooled = jnp.mean(x, axis=(2, 3))                                   # (N, C)
    h = pooled @ w1.T                                                   # (N, E)
    h = (h - bn_mean) / jnp.sqrt(bn_var + eps) * bn_gamma + bn_beta
    h = jnp.maximum(h, 0.0)
    s = h @ w2.T                                                        # (N, C)
    s = jnp.clip(s / 6.0 + 0.5, 0.0, 1.0)
    return x * s[:, :, None, None]


def _make_params(C, E, key):
    kw1, kw2 = jax.random.split(key, 2)
    # Conv2d(C, E, 1, bias=False).weight -> (E, C); Conv2d(E, C, 1) -> (C, E).
    w1 = jax.random.normal(kw1, (E, C), dtype=jnp.float32) * 0.5
    w2 = jax.random.normal(kw2, (C, E), dtype=jnp.float32) * 0.5
    bn_gamma = 1.0 + 0.1 * jnp.arange(E, dtype=jnp.float32)
    bn_beta = 0.05 * jnp.arange(E, dtype=jnp.float32)
    bn_mean = 0.01 * jnp.arange(E, dtype=jnp.float32)
    bn_var = 1.0 + 0.02 * jnp.arange(E, dtype=jnp.float32)
    return w1, w2, bn_gamma, bn_beta, bn_mean, bn_var


if __name__ == "__main__":
    key = jax.random.PRNGKey(0)
    k1, k2, kp1, kp2 = jax.random.split(key, 4)

    # --- Primary check: batch=2, in_size=4, spatial=16x16 (HW % 128 == 0). ---
    N, C, H, W = 2, 4, 16, 16
    E = max(C // 4, 8)                      # expand_size = 8
    x = jax.random.normal(k1, (N, C, H, W), dtype=jnp.float32)
    params = _make_params(C, E, kp1)

    out = jax.block_until_ready(se_module(x, *params))
    ref = se_module_ref(x, *params)
    assert out.shape == (N, C, H, W)
    assert jnp.allclose(out, ref, atol=1e-5, rtol=1e-5), "mismatch vs reference"

    # --- Secondary check: exercises spatial zero-padding (7x7 -> 128 lanes)
    #     and the ragged grid (N=3, block_n=2 forced). ---
    N2, C2, H2, W2 = 3, 4, 7, 7
    E2 = max(C2 // 4, 8)
    x2 = jax.random.normal(k2, (N2, C2, H2, W2), dtype=jnp.float32)
    params2 = _make_params(C2, E2, kp2)

    out2 = jax.block_until_ready(se_module(x2, *params2, block_n=2))
    ref2 = se_module_ref(x2, *params2)
    assert out2.shape == (N2, C2, H2, W2)
    assert jnp.allclose(out2, ref2, atol=1e-5, rtol=1e-5), "mismatch (padded/ragged)"

    print("KERNEL_OK")
</pallas_src>

<mosaic_0001>
module attributes {stable_mosaic.version = 11 : i64} {
  func.func @se_kernel(%arg0: i32, %arg1: memref<2x4x256xf32, #tpu.memory_space<vmem>>, %arg2: memref<4x8xf32, #tpu.memory_space<vmem>>, %arg3: memref<1x8xf32, #tpu.memory_space<vmem>>, %arg4: memref<8x4xf32, #tpu.memory_space<vmem>>, %arg5: memref<2x4x256xf32, #tpu.memory_space<vmem>>) attributes {dimension_semantics = [#tpu.dimension_semantics<parallel>], iteration_bounds = array<i64: 1>, scalar_prefetch = 0 : i64, scratch_operands = 0 : i64, tpu.core_type = #tpu.core_type<tc>, window_params = [{transform_indices = @transform_0, window_bounds = array<i64: 2, 4, 256>}, {pipeline_mode = #tpu.pipeline_mode<synchronous>, transform_indices = @transform_1, window_bounds = array<i64: 4, 8>}, {pipeline_mode = #tpu.pipeline_mode<synchronous>, transform_indices = @transform_2, window_bounds = array<i64: 1, 8>}, {pipeline_mode = #tpu.pipeline_mode<synchronous>, transform_indices = @transform_3, window_bounds = array<i64: 8, 4>}, {transform_indices = @transform_4, window_bounds = array<i64: 2, 4, 256>}]} {
    %c0 = arith.constant 0 : index
    %c0_0 = arith.constant 0 : index
    %c0_1 = arith.constant 0 : index
    %0 = vector.load %arg1[%c0, %c0_0, %c0_1] : memref<2x4x256xf32, #tpu.memory_space<vmem>>, vector<2x4x256xf32>
    %cst = arith.constant dense<0.000000e+00> : vector<2x4xf32>
    %1 = vector.multi_reduction <add>, %0, %cst [2] : vector<2x4x256xf32> to vector<2x4xf32>
    %cst_2 = arith.constant 3.906250e-03 : f32
    %2 = vector.broadcast %cst_2 : f32 to vector<2x4xf32>
    %3 = arith.mulf %1, %2 : vector<2x4xf32>
    %c0_3 = arith.constant 0 : index
    %c0_4 = arith.constant 0 : index
    %4 = vector.load %arg2[%c0_3, %c0_4] : memref<4x8xf32, #tpu.memory_space<vmem>>, vector<4x8xf32>
    %cst_5 = arith.constant dense<0.000000e+00> : vector<2x8xf32>
    %5 = tpu.matmul %3, %4, %cst_5 {dimension_numbers = #tpu.dot_dimension_numbers<[1], [0], [0], [1], [0, 0, 1, 1], [], []>} : vector<2x4xf32>, vector<4x8xf32>, vector<2x8xf32> -> vector<2x8xf32>
    %c0_6 = arith.constant 0 : index
    %c0_7 = arith.constant 0 : index
    %6 = vector.load %arg3[%c0_6, %c0_7] : memref<1x8xf32, #tpu.memory_space<vmem>>, vector<1x8xf32>
    %7 = vector.broadcast %6 : vector<1x8xf32> to vector<2x8xf32>
    %8 = arith.addf %5, %7 : vector<2x8xf32>
    %cst_8 = arith.constant 0.000000e+00 : f32
    %9 = vector.broadcast %cst_8 : f32 to vector<2x8xf32>
    %10 = arith.maximumf %8, %9 : vector<2x8xf32>
    %c0_9 = arith.constant 0 : index
    %c0_10 = arith.constant 0 : index
    %11 = vector.load %arg4[%c0_9, %c0_10] : memref<8x4xf32, #tpu.memory_space<vmem>>, vector<8x4xf32>
    %cst_11 = arith.constant dense<0.000000e+00> : vector<2x4xf32>
    %12 = tpu.matmul %10, %11, %cst_11 {dimension_numbers = #tpu.dot_dimension_numbers<[1], [0], [0], [1], [0, 0, 1, 1], [], []>} : vector<2x8xf32>, vector<8x4xf32>, vector<2x4xf32> -> vector<2x4xf32>
    %cst_12 = arith.constant 5.000000e-01 : f32
    %13 = vector.broadcast %cst_12 : f32 to vector<2x4xf32>
    %14 = arith.addf %12, %13 : vector<2x4xf32>
    %cst_13 = arith.constant 0.000000e+00 : f32
    %cst_14 = arith.constant 1.000000e+00 : f32
    %15 = vector.broadcast %cst_13 : f32 to vector<2x4xf32>
    %16 = arith.maximumf %15, %14 : vector<2x4xf32>
    %17 = vector.broadcast %cst_14 : f32 to vector<2x4xf32>
    %18 = arith.minimumf %17, %16 : vector<2x4xf32>
    %c0_15 = arith.constant 0 : index
    %c0_16 = arith.constant 0 : index
    %c0_17 = arith.constant 0 : index
    %19 = vector.load %arg1[%c0_15, %c0_16, %c0_17] : memref<2x4x256xf32, #tpu.memory_space<vmem>>, vector<2x4x256xf32>
    %20 = vector.shape_cast %18 : vector<2x4xf32> to vector<2x4x1xf32>
    %21 = vector.broadcast %20 : vector<2x4x1xf32> to vector<2x4x256xf32>
    %22 = arith.mulf %19, %21 : vector<2x4x256xf32>
    %c0_18 = arith.constant 0 : index
    %c0_19 = arith.constant 0 : index
    %c0_20 = arith.constant 0 : index
    %23 = vector.load %arg5[%c0_18, %c0_19, %c0_20] : memref<2x4x256xf32, #tpu.memory_space<vmem>>, vector<2x4x256xf32>
    tpu.vector_store %arg5[%c0_18, %c0_19, %c0_20], %22 {strides = array<i32>} : memref<2x4x256xf32, #tpu.memory_space<vmem>>, vector<2x4x256xf32>,
    return
  }
  func.func @transform_0(%arg0: i32) -> (i32, i32, i32) {
    %c0_i32 = arith.constant 0 : i32
    %c0_i32_0 = arith.constant 0 : i32
    %c0_i32_1 = arith.constant 0 : i32
    return %arg0, %c0_i32, %c0_i32_0 : i32, i32, i32
  }
  func.func @transform_1(%arg0: i32) -> (i32, i32) {
    %c0_i32 = arith.constant 0 : i32
    %c0_i32_0 = arith.constant 0 : i32
    %c0_i32_1 = arith.constant 0 : i32
    return %c0_i32, %c0_i32_0 : i32, i32
  }
  func.func @transform_2(%arg0: i32) -> (i32, i32) {
    %c0_i32 = arith.constant 0 : i32
    %c0_i32_0 = arith.constant 0 : i32
    %c0_i32_1 = arith.constant 0 : i32
    return %c0_i32, %c0_i32_0 : i32, i32
  }
  func.func @transform_3(%arg0: i32) -> (i32, i32) {
    %c0_i32 = arith.constant 0 : i32
    %c0_i32_0 = arith.constant 0 : i32
    %c0_i32_1 = arith.constant 0 : i32
    return %c0_i32, %c0_i32_0 : i32, i32
  }
  func.func @transform_4(%arg0: i32) -> (i32, i32, i32) {
    %c0_i32 = arith.constant 0 : i32
    %c0_i32_0 = arith.constant 0 : i32
    %c0_i32_1 = arith.constant 0 : i32
    return %arg0, %c0_i32, %c0_i32_0 : i32, i32, i32
  }
}

</mosaic_0001>

<bundles_post_ra>
// kernel: tpu_custom_call.1
= control target key start
LH: loop header
LB: loop body
LE: loop exit
PB: predicated region body
PF: predicated region fallthrough
CT: control target
= control target key end

     0   :  { %9 = vsyncpa [#allocation3], 0  ;;  %s417_s0 = inlined_call_operand.hbm [shape: f32[2,4,256], index: 0, kind: input, shape index: {}]   ;;  %s418_s1 = inlined_call_operand.vmem [shape: f32[4,8], index: 1, kind: input, shape index: {}]   ;;  %s419_s2 = inlined_call_operand.vmem [shape: f32[1,8], index: 2, kind: input, shape index: {}]   ;;  %s420_s3 = inlined_call_operand.vmem [shape: f32[8,4], index: 3, kind: input, shape index: {}]   ;;  %s421_s4 = inlined_call_operand.hbm [shape: f32[2,4,256], index: 4, kind: output, shape index: {}]  }
   0x1   :  { %10 = vsyncpa [#allocation4], 0  ;;  %s353_s15 = smov [#allocation2]  }
   0x2   :  { %s16_s16 = sshll.u32 %s353_s15, 4  ;;  %s17_s16 = int_to_ptr.vmem [resolvable:$true] %s16_s16 }
   0x3   :  { %s317_s17 = scalar_lea.vmem %s17_s16, 256  ;;  %p322_p1 = scmp.lt.s32.totalorder %s17_s16, %s17_s16 }
   0x4   :  { %p318_p0 = scmp.ne.s32.totalorder %s17_s16, %s317_s17  ;;  %p323_p2 = scmp.lt.s32.totalorder %s317_s17, %s317_s17 }
   0x6   :  { %p324_p3 = por %p323_p2, %p322_p1 }
   0x8   :  { %p325_p4 = pnand %p324_p3, %p318_p0 }
   0xa   :  { %328 = shalt.err (!%p325_p4)
}
   0xb   :  { %s354_s18 = smov 128   ;;  %s355_s19 = smov 8  }
   0xc   :  { %22 = dma.hbm_to_vmem [thread:$0]  %s417_s0, 256, %s17_s16, [#allocation3], %s354_s18, %s354_s18, %s355_s19  }
   0xd   :  { %349 = dma.done.wait [#allocation3], 256  }
   0xe   :  { %350 = vsyncadd [#allocation3], 4294967040  ;;  %vm40_vm0 = vcmask 1043456   ;;  %v32_v0 = vld [vmem:[#allocation2] sm:$0xff]  ;;  %v391_v1 = vld [vmem:[#allocation2 + $0x8] sm:$0xff]  ;;  %v356_v11 = vmov 0.0   ;;  %v63_v12 = vlaneseq }
   0xf   :  { %v36_v2 = vcombine.high %v32_v0, %v32_v0  ;;  %v41_v3 = vsel %vm40_vm0, %v32_v0, 0.0  ;;  %v37_v4 = vcombine.high %v391_v1, %v391_v1  ;;  %v46_v6 = vsel %vm40_vm0, %v391_v1, 0.0  ;;  %v53_v10 = vld [vmem:[%s418_s1] sm:$0xf]  ;;  %290 = vmatprep.subr.mxu0 %v356_v11  ;;  %295 = vmatprep.subr.mxu1 %v356_v11 }
  0x10   :  { %vm357_vm1 = vmmov 0   ;;  %291 = vmatpush3.msk.msra.mxu0 %vm40_vm0, %v53_v10  ;;  %v64_v13 = vand.u32 127, %v63_v12  ;;  %v66_v14 = vshrl.u32 %v63_v12, 7  ;;  %vm73_vm2 = vcmask 1041409   ;;  %v152_v23 = vld [vmem:[%s420_s3] sm:$0xff] }
  0x11   :  { %v42_v5 = vsel %vm40_vm0, %v36_v2, 0.0  ;;  %v47_v7 = vsel %vm40_vm0, %v37_v4, 0.0  ;;  %292 = vmatprep.mubr.msk.f32.mxu0 %vm357_vm1, %v356_v11  ;;  %297 = vmatprep.mubr.msk.f32.mxu1 %vm357_vm1, %v356_v11  ;;  %vm75_vm3 = vcmask 31744   ;;  %v282_v24 = vld [vmem:[%s419_s2] ss:$0 sm:$0xff]  ;;  %vm153_vm4 = vcmask 64512  }
  0x12   :  { %v43_v8 = vadd.f32 %v42_v5, %v41_v3  ;;  %v48_v9 = vadd.f32 %v47_v7, %v46_v6  ;;  %v67_v16 = vsub.s32 %v64_v13, %v66_v14  ;;  %296 = vmatpush3.msra.mxu1 %v152_v23  ;;  %v231_v33 = vsub.s32 0, %v66_v14  ;;  %s359_s2 = smov [#allocation5]  }
  0x13   :  { %v238_v36 = vsub.s32 1, %v66_v14  ;;  %v358_v38 = vmov 839922192   ;;  %s270_s3 = sshll.u32 %s359_s2, 4  ;;  %s271_s3 = int_to_ptr.vmem [resolvable:$true] %s270_s3 }
  0x14   :  { %44 = vadd.xlane.f32.xlu0 %v43_v8  ;;  %v246_v39 = vunpack.c.l.s4 %v358_v38  ;;  %s329_s26 = scalar_lea.vmem %s271_s3, 256  ;;  %p334_p6 = scmp.lt.s32.totalorder %s271_s3, %s271_s3 }
  0x15   :  { %p330_p5 = scmp.ne.s32.totalorder %s271_s3, %s329_s26  ;;  %p335_p7 = scmp.lt.s32.totalorder %s329_s26, %s329_s26 }
  0x16   :  { %v247_v40 = vunpack.c.0.s8 %v246_v39 }
  0x17   :  { %p336_p8 = por %p335_p7, %p334_p6 }
  0x18   :  { %49 = vadd.xlane.f32.xlu0 %v48_v9  ;;  %v250_v41 = vsub.s32 %v247_v40, %v66_v14 }
  0x19   :  { %p337_p9 = pnand %p336_p8, %p330_p5 }
  0x9d   :  { %v45_v15 = vpop.xlane.xlu0 %44 }
  0x9e   :  { %v51_v17 = vmul.f32 0.00390625, %v45_v15 }
  0xa0   :  { %v68_v20 = vrot.slane %v51_v17, %v67_v16 }
  0xa1   :  { %v50_v18 = vpop.xlane.xlu0 %49 }
  0xa2   :  { %v52_v19 = vmul.f32 0.00390625, %v50_v18 }
  0xa4   :  { %v72_v21 = vrot.slane %v52_v19, %v67_v16 }
  0xa6   :  { %v74_v22 = vsel %vm73_vm2, %v72_v21, %v68_v20 }
  0xa7   :  { %293 = vmatmul.mubr.msk.f32.vlgmr.msra.gmra.mxu0 %vm75_vm3, %v74_v22 }
 0x167   :  { %v147_v25 = vpop.f32.mrf.mxu0 }
 0x168   :  { %v148_v26 = vadd.f32 %v282_v24, %v147_v25 }
 0x169   :  { %v294_v27 = vpop.f32.mrf.mxu0 }
 0x16a   :  { %v151_v28 = vmax.f32 %v148_v26, 0.0 }
 0x16c   :  { %298 = vmatmul.mubr.msk.f32.vlgmr.msra.gmra.mxu1 %vm153_vm4, %v151_v28 }
 0x22c   :  { %v223_v29 = vpop.f32.mrf.mxu1 }
 0x22d   :  { %v224_v30 = vadd.f32 0.5, %v223_v29 }
 0x22e   :  { %v299_v31 = vpop.f32.mrf.mxu1 }
 0x22f   :  { %v227_v32 = vmax.f32 %v224_v30, 0.0 }
 0x231   :  { %v228_v34 = vmin.f32 %v227_v32, 1.0 }
 0x233   :  { %v232_v35 = vrot.slane %v228_v34, %v231_v33  ;;  %v239_v37 = vrot.slane %v228_v34, %v238_v36 }
 0x235   :  { %234 = vbcast.lane.b32.xlu1 %v232_v35, 256 }
 0x239   :  { %241 = vbcast.lane.b32.xlu1 %v239_v37, 256 }
 0x2a7   :  { %v235_v42 = vpop.permute.xlu1 %234 }
 0x2a8   :  { %v251_v43 = vrot.slane %v235_v42, %v250_v41 }
 0x2aa   :  { %v261_v44 = vmul.f32 %v251_v43, %v32_v0 }
 0x2ab   :  { %v242_v45 = vpop.permute.xlu1 %241 }
 0x2ac   :  { %263 = vst [vmem:[#allocation5] sm:$0xff] %v261_v44  ;;  %v258_v46 = vrot.slane %v242_v45, %v250_v41 }
 0x2ae   :  { %v262_v47 = vmul.f32 %v258_v46, %v391_v1 }
 0x2b0   :  { %264 = vst [vmem:[#allocation5 + $0x8] sm:$0xff] %v262_v47 }
 0x2b1   :  { %340 = shalt.err (!%p337_p9)
}
 0x2b2   :  { %276 = dma.vmem_to_hbm [thread:$0]  %s271_s3, 256, %s421_s4, [#allocation4], %s354_s18, %s354_s18, %s355_s19  }
 0x2b3   :  { %351 = dma.done.wait [#allocation4], 256  }
 0x2b4   :  { %352 = vsyncadd [#allocation4], 4294967040 }
 0x2b5   :  { %280 = vsyncpa [#allocation3], 1 }
 0x2b6   :  { %281 = vsyncpa [#allocation4], 1 }

</bundles_post_ra>
